<compile_context>
chip_gen: v7x
topology: tpu7x:2x2x1
jax: 0.10.0
libtpu: 0.0.40
codegen_flags: <defaults>
</compile_context>

<pallas_src>
import math
import functools

import jax
import jax.numpy as jnp
from jax.experimental import pallas as pl
from jax.experimental.pallas import tpu as pltpu


# ----------------------------------------------------------------------------
# Fused kernel: per-batch QKV projection + all-head attention + merge Linear
# ----------------------------------------------------------------------------
def _mhatt_kernel(q_ref, k_ref, v_ref, mbias_ref,
                  wq_ref, wk_ref, wv_ref, wm_ref,
                  bq_ref, bk_ref, bv_ref, bm_ref,
                  out_ref, *, head_num, head_dim, compute_dtype, approx_recip):
    cdt = compute_dtype

    q = q_ref[0].astype(cdt)          # (S_q, H)
    k = k_ref[0].astype(cdt)          # (S_k, H)
    v = v_ref[0].astype(cdt)          # (S_k, H)

    # Full-width projections (N = H). Weights are pre-transposed to (H, H);
    # the Q weight/bias are pre-scaled by 1/sqrt(head_dim) in the wrapper.
    q_p = jnp.dot(q, wq_ref[...], preferred_element_type=jnp.float32) + bq_ref[...]
    k_p = jnp.dot(k, wk_ref[...], preferred_element_type=jnp.float32) + bk_ref[...]
    v_p = jnp.dot(v, wv_ref[...], preferred_element_type=jnp.float32) + bv_ref[...]

    mbias = mbias_ref[0]              # (1, S_k) additive bias: -1e9 masked, 0 otherwise

    ctx_heads = []
    for h in range(head_num):         # static loop, head_num is compile-time
        sl = slice(h * head_dim, (h + 1) * head_dim)
        qh = q_p[:, sl].astype(cdt)   # (S_q, hd)
        kh = k_p[:, sl].astype(cdt)   # (S_k, hd)
        vh = v_p[:, sl].astype(cdt)   # (S_k, hd)

        # Scores (already scaled through the Q projection), masking + softmax in f32.
        scores = jnp.dot(qh, kh.T, preferred_element_type=jnp.float32)   # (S_q, S_k)
        scores = scores + mbias
        scores = scores - jnp.max(scores, axis=-1, keepdims=True)
        p = jnp.exp(scores)
        denom = jnp.sum(p, axis=-1, keepdims=True)
        p = p * pl.reciprocal(denom, approx=approx_recip)
        # Dropout: eval-mode identity.

        ctx_heads.append(
            jnp.dot(p.astype(cdt), vh, preferred_element_type=jnp.float32))

    # Lane-dense (S_q, H) context, merge Linear fused in (no HBM round-trip).
    ctx = jnp.concatenate(ctx_heads, axis=-1)
    out = jnp.dot(ctx.astype(cdt), wm_ref[...],
                  preferred_element_type=jnp.float32) + bm_ref[...]
    out_ref[0] = out.astype(out_ref.dtype)


# ----------------------------------------------------------------------------
# Wrapper
# ----------------------------------------------------------------------------
def mhatt_forward(v, k, q, mask, params, head_num, head_dim, *,
                  compute_dtype=jnp.bfloat16):
    B, S_q, H = q.shape
    _, S_k, _ = k.shape
    assert head_num * head_dim == H
    assert v.shape == k.shape

    cdt = compute_dtype
    approx_recip = (cdt == jnp.bfloat16)
    scale = 1.0 / math.sqrt(head_dim)

    # Pre-transpose weights to (in, out); fold the score scale into the Q path;
    # cast weights once in the wrapper (activations are cast in-kernel).
    wq_t = (params["wq"].T * scale).astype(cdt)
    wk_t = params["wk"].T.astype(cdt)
    wv_t = params["wv"].T.astype(cdt)
    wm_t = params["wm"].T.astype(cdt)
    bq = (params["bq"] * scale).reshape(1, H).astype(jnp.float32)
    bk = params["bk"].reshape(1, H).astype(jnp.float32)
    bv = params["bv"].reshape(1, H).astype(jnp.float32)
    bm = params["bm"].reshape(1, H).astype(jnp.float32)

    # Key mask as an additive (B, 1, S_k) bias row (no (B, S, S) materialization).
    if mask is None:
        mbias = jnp.zeros((B, 1, S_k), jnp.float32)
    else:
        mbias = jnp.where(jnp.reshape(mask, (B, 1, S_k)),
                          jnp.float32(-1e9), jnp.float32(0.0))

    # Rough VMEM need (double-buffered blocks + f32 temporaries); only raise the
    # scoped limit when the default 32 MiB is insufficient (cap: 64 MiB for v7x).
    itemsize = jnp.dtype(cdt).itemsize
    est = (2 * 4 * (S_q * H + 2 * S_k * H + S_k)            # input blocks (f32, 2x buffered)
           + 2 * itemsize * 4 * H * H + 2 * 4 * 4 * H        # weights + biases
           + 4 * (3 * (S_q + 2 * S_k) * H // 3 + S_q * S_k + S_q * H))  # temporaries
    cp_kwargs = dict(dimension_semantics=("parallel",))
    if est > 32 * 1024 * 1024:
        cp_kwargs["vmem_limit_bytes"] = int(min(2 * est, 64 * 1024 * 1024))

    kern = functools.partial(_mhatt_kernel,
                             head_num=head_num, head_dim=head_dim,
                             compute_dtype=cdt, approx_recip=approx_recip)

    out = pl.pallas_call(
        kern,
        out_shape=jax.ShapeDtypeStruct((B, S_q, H), jnp.float32),
        grid_spec=pltpu.PrefetchScalarGridSpec(
            num_scalar_prefetch=0,
            grid=(B,),
            in_specs=[
                pl.BlockSpec((1, S_q, H), lambda b: (b, 0, 0)),    # q
                pl.BlockSpec((1, S_k, H), lambda b: (b, 0, 0)),    # k
                pl.BlockSpec((1, S_k, H), lambda b: (b, 0, 0)),    # v
                pl.BlockSpec((1, 1, S_k), lambda b: (b, 0, 0)),    # mask bias row
                pl.BlockSpec((H, H), lambda b: (0, 0)),            # Wq^T (pre-scaled)
                pl.BlockSpec((H, H), lambda b: (0, 0)),            # Wk^T
                pl.BlockSpec((H, H), lambda b: (0, 0)),            # Wv^T
                pl.BlockSpec((H, H), lambda b: (0, 0)),            # Wm^T
                pl.BlockSpec((1, H), lambda b: (0, 0)),            # bq (pre-scaled)
                pl.BlockSpec((1, H), lambda b: (0, 0)),            # bk
                pl.BlockSpec((1, H), lambda b: (0, 0)),            # bv
                pl.BlockSpec((1, H), lambda b: (0, 0)),            # bm
            ],
            out_specs=pl.BlockSpec((1, S_q, H), lambda b: (b, 0, 0)),
        ),
        compiler_params=pltpu.CompilerParams(**cp_kwargs),
    )(q, k, v, mbias, wq_t, wk_t, wv_t, wm_t, bq, bk, bv, bm)

    return out


# ----------------------------------------------------------------------------
# Pure-JAX reference (mirrors the PyTorch forward, eval mode, f32)
# ----------------------------------------------------------------------------
def mhatt_reference(v, k, q, mask, params, head_num, head_dim):
    B, S, H = q.shape

    def lin(x, W, b):
        return x @ W.T + b

    v_ = lin(v, params["wv"], params["bv"]).reshape(B, -1, head_num, head_dim).transpose(0, 2, 1, 3)
    k_ = lin(k, params["wk"], params["bk"]).reshape(B, -1, head_num, head_dim).transpose(0, 2, 1, 3)
    q_ = lin(q, params["wq"], params["bq"]).reshape(B, -1, head_num, head_dim).transpose(0, 2, 1, 3)

    scores = jnp.einsum("bhqd,bhkd->bhqk", q_, k_) / math.sqrt(head_dim)
    if mask is not None:
        scores = jnp.where(mask, -1e9, scores)
    att = jax.nn.softmax(scores, axis=-1)
    ctx = jnp.einsum("bhqk,bhkd->bhqd", att, v_)
    ctx = ctx.transpose(0, 2, 1, 3).reshape(B, -1, H)
    return lin(ctx, params["wm"], params["bm"])


# ----------------------------------------------------------------------------
# Deterministic parameter init (PyTorch nn.Linear default: U(-1/sqrt(in), 1/sqrt(in)))
# ----------------------------------------------------------------------------
def init_params(key, hidden_size):
    bound = 1.0 / math.sqrt(hidden_size)
    names = ["wq", "bq", "wk", "bk", "wv", "bv", "wm", "bm"]
    keys = jax.random.split(key, len(names))
    params = {}
    for name, kk in zip(names, keys):
        shape = (hidden_size, hidden_size) if name.startswith("w") else (hidden_size,)
        params[name] = jax.random.uniform(kk, shape, jnp.float32, -bound, bound)
    return params


if __name__ == "__main__":
    B, S = 2, 8
    hidden_size = 32
    head_num = 4
    head_dim = hidden_size // head_num
    dropout = 0.1  # eval-mode -> identity

    root = jax.random.PRNGKey(0)
    kp, kv, kk, kq, km = jax.random.split(root, 5)

    params = init_params(kp, hidden_size)
    v = jax.random.normal(kv, (B, S, hidden_size), jnp.float32)
    k = jax.random.normal(kk, (B, S, hidden_size), jnp.float32)
    q = jax.random.normal(kq, (B, S, hidden_size), jnp.float32)
    # Boolean padding mask (B, 1, 1, S_k): True = masked. Keep at least one unmasked key.
    mask = jax.random.bernoulli(km, 0.3, (B, 1, 1, S))
    mask = mask.at[:, :, :, 0].set(False)

    ref = mhatt_reference(v, k, q, mask, params, head_num, head_dim)

    # f32 path: tight numerical check against the reference.
    out_f32 = mhatt_forward(v, k, q, mask, params, head_num, head_dim,
                            compute_dtype=jnp.float32)
    out_f32 = jax.block_until_ready(out_f32)
    assert out_f32.shape == (B, S, hidden_size)
    assert jnp.allclose(out_f32, ref, rtol=1e-4, atol=1e-4), (
        f"f32 max abs err {jnp.max(jnp.abs(out_f32 - ref))}")

    # bf16 fast path (MXU-native): looser tolerance against the f32 reference.
    out_bf16 = mhatt_forward(v, k, q, mask, params, head_num, head_dim,
                             compute_dtype=jnp.bfloat16)
    out_bf16 = jax.block_until_ready(out_bf16)
    assert out_bf16.shape == (B, S, hidden_size)
    assert jnp.allclose(out_bf16, ref, rtol=5e-2, atol=1e-1), (
        f"bf16 max abs err {jnp.max(jnp.abs(out_bf16 - ref))}")

    print("KERNEL_OK")
</pallas_src>

<mosaic_0001>
module attributes {stable_mosaic.version = 11 : i64} {
  func.func @_mhatt_kernel(%arg0: i32, %arg1: memref<1x8x32xf32, #tpu.memory_space<vmem>>, %arg2: memref<1x8x32xf32, #tpu.memory_space<vmem>>, %arg3: memref<1x8x32xf32, #tpu.memory_space<vmem>>, %arg4: memref<1x1x8xf32, #tpu.memory_space<vmem>>, %arg5: memref<32x32xf32, #tpu.memory_space<vmem>>, %arg6: memref<32x32xf32, #tpu.memory_space<vmem>>, %arg7: memref<32x32xf32, #tpu.memory_space<vmem>>, %arg8: memref<32x32xf32, #tpu.memory_space<vmem>>, %arg9: memref<1x32xf32, #tpu.memory_space<vmem>>, %arg10: memref<1x32xf32, #tpu.memory_space<vmem>>, %arg11: memref<1x32xf32, #tpu.memory_space<vmem>>, %arg12: memref<1x32xf32, #tpu.memory_space<vmem>>, %arg13: memref<1x8x32xf32, #tpu.memory_space<vmem>>) attributes {dimension_semantics = [#tpu.dimension_semantics<parallel>], iteration_bounds = array<i64: 2>, scalar_prefetch = 0 : i64, scratch_operands = 0 : i64, tpu.core_type = #tpu.core_type<tc>, window_params = [{transform_indices = @transform_0, window_bounds = array<i64: 1, 8, 32>}, {transform_indices = @transform_1, window_bounds = array<i64: 1, 8, 32>}, {transform_indices = @transform_2, window_bounds = array<i64: 1, 8, 32>}, {transform_indices = @transform_3, window_bounds = array<i64: 1, 1, 8>}, {pipeline_mode = #tpu.pipeline_mode<synchronous>, transform_indices = @transform_4, window_bounds = array<i64: 32, 32>}, {pipeline_mode = #tpu.pipeline_mode<synchronous>, transform_indices = @transform_5, window_bounds = array<i64: 32, 32>}, {pipeline_mode = #tpu.pipeline_mode<synchronous>, transform_indices = @transform_6, window_bounds = array<i64: 32, 32>}, {pipeline_mode = #tpu.pipeline_mode<synchronous>, transform_indices = @transform_7, window_bounds = array<i64: 32, 32>}, {pipeline_mode = #tpu.pipeline_mode<synchronous>, transform_indices = @transform_8, window_bounds = array<i64: 1, 32>}, {pipeline_mode = #tpu.pipeline_mode<synchronous>, transform_indices = @transform_9, window_bounds = array<i64: 1, 32>}, {pipeline_mode = #tpu.pipeline_mode<synchronous>, transform_indices = @transform_10, window_bounds = array<i64: 1, 32>}, {pipeline_mode = #tpu.pipeline_mode<synchronous>, transform_indices = @transform_11, window_bounds = array<i64: 1, 32>}, {transform_indices = @transform_12, window_bounds = array<i64: 1, 8, 32>}]} {
    %c0 = arith.constant 0 : index
    %c0_0 = arith.constant 0 : index
    %c0_1 = arith.constant 0 : index
    %0 = vector.load %arg1[%c0, %c0_0, %c0_1] : memref<1x8x32xf32, #tpu.memory_space<vmem>>, vector<1x8x32xf32>
    %1 = vector.shape_cast %0 : vector<1x8x32xf32> to vector<8x32xf32>
    %c0_2 = arith.constant 0 : index
    %c0_3 = arith.constant 0 : index
    %c0_4 = arith.constant 0 : index
    %2 = vector.load %arg2[%c0_2, %c0_3, %c0_4] : memref<1x8x32xf32, #tpu.memory_space<vmem>>, vector<1x8x32xf32>
    %3 = vector.shape_cast %2 : vector<1x8x32xf32> to vector<8x32xf32>
    %c0_5 = arith.constant 0 : index
    %c0_6 = arith.constant 0 : index
    %c0_7 = arith.constant 0 : index
    %4 = vector.load %arg3[%c0_5, %c0_6, %c0_7] : memref<1x8x32xf32, #tpu.memory_space<vmem>>, vector<1x8x32xf32>
    %5 = vector.shape_cast %4 : vector<1x8x32xf32> to vector<8x32xf32>
    %c0_8 = arith.constant 0 : index
    %c0_9 = arith.constant 0 : index
    %6 = vector.load %arg5[%c0_8, %c0_9] : memref<32x32xf32, #tpu.memory_space<vmem>>, vector<32x32xf32>
    %cst = arith.constant dense<0.000000e+00> : vector<8x32xf32>
    %7 = tpu.matmul %1, %6, %cst {dimension_numbers = #tpu.dot_dimension_numbers<[1], [0], [0], [1], [0, 0, 1, 1], [], []>} : vector<8x32xf32>, vector<32x32xf32>, vector<8x32xf32> -> vector<8x32xf32>
    %c0_10 = arith.constant 0 : index
    %c0_11 = arith.constant 0 : index
    %8 = vector.load %arg9[%c0_10, %c0_11] : memref<1x32xf32, #tpu.memory_space<vmem>>, vector<1x32xf32>
    %9 = vector.broadcast %8 : vector<1x32xf32> to vector<8x32xf32>
    %10 = arith.addf %7, %9 : vector<8x32xf32>
    %c0_12 = arith.constant 0 : index
    %c0_13 = arith.constant 0 : index
    %11 = vector.load %arg6[%c0_12, %c0_13] : memref<32x32xf32, #tpu.memory_space<vmem>>, vector<32x32xf32>
    %cst_14 = arith.constant dense<0.000000e+00> : vector<8x32xf32>
    %12 = tpu.matmul %3, %11, %cst_14 {dimension_numbers = #tpu.dot_dimension_numbers<[1], [0], [0], [1], [0, 0, 1, 1], [], []>} : vector<8x32xf32>, vector<32x32xf32>, vector<8x32xf32> -> vector<8x32xf32>
    %c0_15 = arith.constant 0 : index
    %c0_16 = arith.constant 0 : index
    %13 = vector.load %arg10[%c0_15, %c0_16] : memref<1x32xf32, #tpu.memory_space<vmem>>, vector<1x32xf32>
    %14 = vector.broadcast %13 : vector<1x32xf32> to vector<8x32xf32>
    %15 = arith.addf %12, %14 : vector<8x32xf32>
    %c0_17 = arith.constant 0 : index
    %c0_18 = arith.constant 0 : index
    %16 = vector.load %arg7[%c0_17, %c0_18] : memref<32x32xf32, #tpu.memory_space<vmem>>, vector<32x32xf32>
    %cst_19 = arith.constant dense<0.000000e+00> : vector<8x32xf32>
    %17 = tpu.matmul %5, %16, %cst_19 {dimension_numbers = #tpu.dot_dimension_numbers<[1], [0], [0], [1], [0, 0, 1, 1], [], []>} : vector<8x32xf32>, vector<32x32xf32>, vector<8x32xf32> -> vector<8x32xf32>
    %c0_20 = arith.constant 0 : index
    %c0_21 = arith.constant 0 : index
    %18 = vector.load %arg11[%c0_20, %c0_21] : memref<1x32xf32, #tpu.memory_space<vmem>>, vector<1x32xf32>
    %19 = vector.broadcast %18 : vector<1x32xf32> to vector<8x32xf32>
    %20 = arith.addf %17, %19 : vector<8x32xf32>
    %c0_22 = arith.constant 0 : index
    %c0_23 = arith.constant 0 : index
    %c0_24 = arith.constant 0 : index
    %21 = vector.load %arg4[%c0_22, %c0_23, %c0_24] : memref<1x1x8xf32, #tpu.memory_space<vmem>>, vector<1x1x8xf32>
    %22 = vector.shape_cast %21 : vector<1x1x8xf32> to vector<1x8xf32>
    %23 = vector.extract_strided_slice %10 {offsets = [0, 0], sizes = [8, 8], strides = [1, 1]} : vector<8x32xf32> to vector<8x8xf32>
    %24 = vector.extract_strided_slice %15 {offsets = [0, 0], sizes = [8, 8], strides = [1, 1]} : vector<8x32xf32> to vector<8x8xf32>
    %25 = vector.extract_strided_slice %20 {offsets = [0, 0], sizes = [8, 8], strides = [1, 1]} : vector<8x32xf32> to vector<8x8xf32>
    %26 = tpu.transpose %24, [1, 0] : vector<8x8xf32> -> vector<8x8xf32>
    %cst_25 = arith.constant dense<0.000000e+00> : vector<8x8xf32>
    %27 = tpu.matmul %23, %26, %cst_25 {dimension_numbers = #tpu.dot_dimension_numbers<[1], [0], [0], [1], [0, 0, 1, 1], [], []>} : vector<8x8xf32>, vector<8x8xf32>, vector<8x8xf32> -> vector<8x8xf32>
    %28 = vector.broadcast %22 : vector<1x8xf32> to vector<8x8xf32>
    %29 = arith.addf %27, %28 : vector<8x8xf32>
    %cst_26 = arith.constant dense<0xFF800000> : vector<8xf32>
    %30 = vector.multi_reduction <maximumf>, %29, %cst_26 [1] : vector<8x8xf32> to vector<8xf32>
    %31 = vector.shape_cast %30 : vector<8xf32> to vector<8x1xf32>
    %32 = vector.broadcast %31 : vector<8x1xf32> to vector<8x8xf32>
    %33 = arith.subf %29, %32 : vector<8x8xf32>
    %34 = math.exp %33 : vector<8x8xf32>
    %cst_27 = arith.constant dense<0.000000e+00> : vector<8xf32>
    %35 = vector.multi_reduction <add>, %34, %cst_27 [1] : vector<8x8xf32> to vector<8xf32>
    %36 = vector.shape_cast %35 : vector<8xf32> to vector<8x1xf32>
    %37 = tpu.reciprocal %36 : vector<8x1xf32> -> vector<8x1xf32>
    %38 = vector.broadcast %37 : vector<8x1xf32> to vector<8x8xf32>
    %39 = arith.mulf %34, %38 : vector<8x8xf32>
    %cst_28 = arith.constant dense<0.000000e+00> : vector<8x8xf32>
    %40 = tpu.matmul %39, %25, %cst_28 {dimension_numbers = #tpu.dot_dimension_numbers<[1], [0], [0], [1], [0, 0, 1, 1], [], []>} : vector<8x8xf32>, vector<8x8xf32>, vector<8x8xf32> -> vector<8x8xf32>
    %41 = vector.extract_strided_slice %10 {offsets = [0, 8], sizes = [8, 8], strides = [1, 1]} : vector<8x32xf32> to vector<8x8xf32>
    %42 = vector.extract_strided_slice %15 {offsets = [0, 8], sizes = [8, 8], strides = [1, 1]} : vector<8x32xf32> to vector<8x8xf32>
    %43 = vector.extract_strided_slice %20 {offsets = [0, 8], sizes = [8, 8], strides = [1, 1]} : vector<8x32xf32> to vector<8x8xf32>
    %44 = tpu.transpose %42, [1, 0] : vector<8x8xf32> -> vector<8x8xf32>
    %cst_29 = arith.constant dense<0.000000e+00> : vector<8x8xf32>
    %45 = tpu.matmul %41, %44, %cst_29 {dimension_numbers = #tpu.dot_dimension_numbers<[1], [0], [0], [1], [0, 0, 1, 1], [], []>} : vector<8x8xf32>, vector<8x8xf32>, vector<8x8xf32> -> vector<8x8xf32>
    %46 = vector.broadcast %22 : vector<1x8xf32> to vector<8x8xf32>
    %47 = arith.addf %45, %46 : vector<8x8xf32>
    %cst_30 = arith.constant dense<0xFF800000> : vector<8xf32>
    %48 = vector.multi_reduction <maximumf>, %47, %cst_30 [1] : vector<8x8xf32> to vector<8xf32>
    %49 = vector.shape_cast %48 : vector<8xf32> to vector<8x1xf32>
    %50 = vector.broadcast %49 : vector<8x1xf32> to vector<8x8xf32>
    %51 = arith.subf %47, %50 : vector<8x8xf32>
    %52 = math.exp %51 : vector<8x8xf32>
    %cst_31 = arith.constant dense<0.000000e+00> : vector<8xf32>
    %53 = vector.multi_reduction <add>, %52, %cst_31 [1] : vector<8x8xf32> to vector<8xf32>
    %54 = vector.shape_cast %53 : vector<8xf32> to vector<8x1xf32>
    %55 = tpu.reciprocal %54 : vector<8x1xf32> -> vector<8x1xf32>
    %56 = vector.broadcast %55 : vector<8x1xf32> to vector<8x8xf32>
    %57 = arith.mulf %52, %56 : vector<8x8xf32>
    %cst_32 = arith.constant dense<0.000000e+00> : vector<8x8xf32>
    %58 = tpu.matmul %57, %43, %cst_32 {dimension_numbers = #tpu.dot_dimension_numbers<[1], [0], [0], [1], [0, 0, 1, 1], [], []>} : vector<8x8xf32>, vector<8x8xf32>, vector<8x8xf32> -> vector<8x8xf32>
    %59 = vector.extract_strided_slice %10 {offsets = [0, 16], sizes = [8, 8], strides = [1, 1]} : vector<8x32xf32> to vector<8x8xf32>
    %60 = vector.extract_strided_slice %15 {offsets = [0, 16], sizes = [8, 8], strides = [1, 1]} : vector<8x32xf32> to vector<8x8xf32>
    %61 = vector.extract_strided_slice %20 {offsets = [0, 16], sizes = [8, 8], strides = [1, 1]} : vector<8x32xf32> to vector<8x8xf32>
    %62 = tpu.transpose %60, [1, 0] : vector<8x8xf32> -> vector<8x8xf32>
    %cst_33 = arith.constant dense<0.000000e+00> : vector<8x8xf32>
    %63 = tpu.matmul %59, %62, %cst_33 {dimension_numbers = #tpu.dot_dimension_numbers<[1], [0], [0], [1], [0, 0, 1, 1], [], []>} : vector<8x8xf32>, vector<8x8xf32>, vector<8x8xf32> -> vector<8x8xf32>
    %64 = vector.broadcast %22 : vector<1x8xf32> to vector<8x8xf32>
    %65 = arith.addf %63, %64 : vector<8x8xf32>
    %cst_34 = arith.constant dense<0xFF800000> : vector<8xf32>
    %66 = vector.multi_reduction <maximumf>, %65, %cst_34 [1] : vector<8x8xf32> to vector<8xf32>
    %67 = vector.shape_cast %66 : vector<8xf32> to vector<8x1xf32>
    %68 = vector.broadcast %67 : vector<8x1xf32> to vector<8x8xf32>
    %69 = arith.subf %65, %68 : vector<8x8xf32>
    %70 = math.exp %69 : vector<8x8xf32>
    %cst_35 = arith.constant dense<0.000000e+00> : vector<8xf32>
    %71 = vector.multi_reduction <add>, %70, %cst_35 [1] : vector<8x8xf32> to vector<8xf32>
    %72 = vector.shape_cast %71 : vector<8xf32> to vector<8x1xf32>
    %73 = tpu.reciprocal %72 : vector<8x1xf32> -> vector<8x1xf32>
    %74 = vector.broadcast %73 : vector<8x1xf32> to vector<8x8xf32>
    %75 = arith.mulf %70, %74 : vector<8x8xf32>
    %cst_36 = arith.constant dense<0.000000e+00> : vector<8x8xf32>
    %76 = tpu.matmul %75, %61, %cst_36 {dimension_numbers = #tpu.dot_dimension_numbers<[1], [0], [0], [1], [0, 0, 1, 1], [], []>} : vector<8x8xf32>, vector<8x8xf32>, vector<8x8xf32> -> vector<8x8xf32>
    %77 = vector.extract_strided_slice %10 {offsets = [0, 24], sizes = [8, 8], strides = [1, 1]} : vector<8x32xf32> to vector<8x8xf32>
    %78 = vector.extract_strided_slice %15 {offsets = [0, 24], sizes = [8, 8], strides = [1, 1]} : vector<8x32xf32> to vector<8x8xf32>
    %79 = vector.extract_strided_slice %20 {offsets = [0, 24], sizes = [8, 8], strides = [1, 1]} : vector<8x32xf32> to vector<8x8xf32>
    %80 = tpu.transpose %78, [1, 0] : vector<8x8xf32> -> vector<8x8xf32>
    %cst_37 = arith.constant dense<0.000000e+00> : vector<8x8xf32>
    %81 = tpu.matmul %77, %80, %cst_37 {dimension_numbers = #tpu.dot_dimension_numbers<[1], [0], [0], [1], [0, 0, 1, 1], [], []>} : vector<8x8xf32>, vector<8x8xf32>, vector<8x8xf32> -> vector<8x8xf32>
    %82 = vector.broadcast %22 : vector<1x8xf32> to vector<8x8xf32>
    %83 = arith.addf %81, %82 : vector<8x8xf32>
    %cst_38 = arith.constant dense<0xFF800000> : vector<8xf32>
    %84 = vector.multi_reduction <maximumf>, %83, %cst_38 [1] : vector<8x8xf32> to vector<8xf32>
    %85 = vector.shape_cast %84 : vector<8xf32> to vector<8x1xf32>
    %86 = vector.broadcast %85 : vector<8x1xf32> to vector<8x8xf32>
    %87 = arith.subf %83, %86 : vector<8x8xf32>
    %88 = math.exp %87 : vector<8x8xf32>
    %cst_39 = arith.constant dense<0.000000e+00> : vector<8xf32>
    %89 = vector.multi_reduction <add>, %88, %cst_39 [1] : vector<8x8xf32> to vector<8xf32>
    %90 = vector.shape_cast %89 : vector<8xf32> to vector<8x1xf32>
    %91 = tpu.reciprocal %90 : vector<8x1xf32> -> vector<8x1xf32>
    %92 = vector.broadcast %91 : vector<8x1xf32> to vector<8x8xf32>
    %93 = arith.mulf %88, %92 : vector<8x8xf32>
    %cst_40 = arith.constant dense<0.000000e+00> : vector<8x8xf32>
    %94 = tpu.matmul %93, %79, %cst_40 {dimension_numbers = #tpu.dot_dimension_numbers<[1], [0], [0], [1], [0, 0, 1, 1], [], []>} : vector<8x8xf32>, vector<8x8xf32>, vector<8x8xf32> -> vector<8x8xf32>
    %95 = tpu.concatenate %40, %58, %76, %94 in 1 : vector<8x8xf32>, vector<8x8xf32>, vector<8x8xf32>, vector<8x8xf32> -> vector<8x32xf32>
    %c0_41 = arith.constant 0 : index
    %c0_42 = arith.constant 0 : index
    %96 = vector.load %arg8[%c0_41, %c0_42] : memref<32x32xf32, #tpu.memory_space<vmem>>, vector<32x32xf32>
    %cst_43 = arith.constant dense<0.000000e+00> : vector<8x32xf32>
    %97 = tpu.matmul %95, %96, %cst_43 {dimension_numbers = #tpu.dot_dimension_numbers<[1], [0], [0], [1], [0, 0, 1, 1], [], []>} : vector<8x32xf32>, vector<32x32xf32>, vector<8x32xf32> -> vector<8x32xf32>
    %c0_44 = arith.constant 0 : index
    %c0_45 = arith.constant 0 : index
    %98 = vector.load %arg12[%c0_44, %c0_45] : memref<1x32xf32, #tpu.memory_space<vmem>>, vector<1x32xf32>
    %99 = vector.broadcast %98 : vector<1x32xf32> to vector<8x32xf32>
    %100 = arith.addf %97, %99 : vector<8x32xf32>
    %c0_46 = arith.constant 0 : index
    %c0_47 = arith.constant 0 : index
    %c0_48 = arith.constant 0 : index
    %101 = vector.load %arg13[%c0_46, %c0_47, %c0_48] : memref<1x8x32xf32, #tpu.memory_space<vmem>>, vector<1x8x32xf32>
    %102 = vector.shape_cast %101 : vector<1x8x32xf32> to vector<8x32xf32>
    %103 = vector.shape_cast %100 : vector<8x32xf32> to vector<1x8x32xf32>
    tpu.vector_store %arg13[%c0_46, %c0_47, %c0_48], %103 {strides = array<i32>} : memref<1x8x32xf32, #tpu.memory_space<vmem>>, vector<1x8x32xf32>,
    return
  }
  func.func @transform_0(%arg0: i32) -> (i32, i32, i32) {
    %c0_i32 = arith.constant 0 : i32
    %c0_i32_0 = arith.constant 0 : i32
    %c0_i32_1 = arith.constant 0 : i32
    return %arg0, %c0_i32, %c0_i32_0 : i32, i32, i32
  }
  func.func @transform_1(%arg0: i32) -> (i32, i32, i32) {
    %c0_i32 = arith.constant 0 : i32
    %c0_i32_0 = arith.constant 0 : i32
    %c0_i32_1 = arith.constant 0 : i32
    return %arg0, %c0_i32, %c0_i32_0 : i32, i32, i32
  }
  func.func @transform_2(%arg0: i32) -> (i32, i32, i32) {
    %c0_i32 = arith.constant 0 : i32
    %c0_i32_0 = arith.constant 0 : i32
    %c0_i32_1 = arith.constant 0 : i32
    return %arg0, %c0_i32, %c0_i32_0 : i32, i32, i32
  }
  func.func @transform_3(%arg0: i32) -> (i32, i32, i32) {
    %c0_i32 = arith.constant 0 : i32
    %c0_i32_0 = arith.constant 0 : i32
    %c0_i32_1 = arith.constant 0 : i32
    return %arg0, %c0_i32, %c0_i32_0 : i32, i32, i32
  }
  func.func @transform_4(%arg0: i32) -> (i32, i32) {
    %c0_i32 = arith.constant 0 : i32
    %c0_i32_0 = arith.constant 0 : i32
    %c0_i32_1 = arith.constant 0 : i32
    return %c0_i32, %c0_i32_0 : i32, i32
  }
  func.func @transform_5(%arg0: i32) -> (i32, i32) {
    %c0_i32 = arith.constant 0 : i32
    %c0_i32_0 = arith.constant 0 : i32
    %c0_i32_1 = arith.constant 0 : i32
    return %c0_i32, %c0_i32_0 : i32, i32
  }
  func.func @transform_6(%arg0: i32) -> (i32, i32) {
    %c0_i32 = arith.constant 0 : i32
    %c0_i32_0 = arith.constant 0 : i32
    %c0_i32_1 = arith.constant 0 : i32
    return %c0_i32, %c0_i32_0 : i32, i32
  }
  func.func @transform_7(%arg0: i32) -> (i32, i32) {
    %c0_i32 = arith.constant 0 : i32
    %c0_i32_0 = arith.constant 0 : i32
    %c0_i32_1 = arith.constant 0 : i32
    return %c0_i32, %c0_i32_0 : i32, i32
  }
  func.func @transform_8(%arg0: i32) -> (i32, i32) {
    %c0_i32 = arith.constant 0 : i32
    %c0_i32_0 = arith.constant 0 : i32
    %c0_i32_1 = arith.constant 0 : i32
    return %c0_i32, %c0_i32_0 : i32, i32
  }
  func.func @transform_9(%arg0: i32) -> (i32, i32) {
    %c0_i32 = arith.constant 0 : i32
    %c0_i32_0 = arith.constant 0 : i32
    %c0_i32_1 = arith.constant 0 : i32
    return %c0_i32, %c0_i32_0 : i32, i32
  }
  func.func @transform_10(%arg0: i32) -> (i32, i32) {
    %c0_i32 = arith.constant 0 : i32
    %c0_i32_0 = arith.constant 0 : i32
    %c0_i32_1 = arith.constant 0 : i32
    return %c0_i32, %c0_i32_0 : i32, i32
  }
  func.func @transform_11(%arg0: i32) -> (i32, i32) {
    %c0_i32 = arith.constant 0 : i32
    %c0_i32_0 = arith.constant 0 : i32
    %c0_i32_1 = arith.constant 0 : i32
    return %c0_i32, %c0_i32_0 : i32, i32
  }
  func.func @transform_12(%arg0: i32) -> (i32, i32, i32) {
    %c0_i32 = arith.constant 0 : i32
    %c0_i32_0 = arith.constant 0 : i32
    %c0_i32_1 = arith.constant 0 : i32
    return %arg0, %c0_i32, %c0_i32_0 : i32, i32, i32
  }
}

</mosaic_0001>

<bundles_post_ra>
// kernel: tpu_custom_call.1
= control target key start
LH: loop header
LB: loop body
LE: loop exit
PB: predicated region body
PF: predicated region fallthrough
CT: control target
= control target key end

     0   :  { %s2914_s0 = inlined_call_operand.hbm [shape: f32[2,8,32], index: 0, kind: input, shape index: {}]   ;;  %s2915_s1 = inlined_call_operand.hbm [shape: f32[2,8,32], index: 1, kind: input, shape index: {}]   ;;  %s2916_s2 = inlined_call_operand.hbm [shape: f32[2,8,32], index: 2, kind: input, shape index: {}]   ;;  %s2917_s3 = inlined_call_operand.vmem [shape: f32[2,1,8], index: 3, kind: input, shape index: {}]   ;;  %s2918_s4 = inlined_call_operand.hbm [shape: f32[32,32], index: 4, kind: input, shape index: {}]   ;;  %s2919_s5 = inlined_call_operand.hbm [shape: f32[32,32], index: 5, kind: input, shape index: {}]   ;;  %s2920_s6 = inlined_call_operand.hbm [shape: f32[32,32], index: 6, kind: input, shape index: {}]   ;;  %s2921_s7 = inlined_call_operand.hbm [shape: f32[32,32], index: 7, kind: input, shape index: {}]   ;;  %s2922_s8 = inlined_call_operand.vmem [shape: f32[1,32], index: 8, kind: input, shape index: {}]   ;;  %s2923_s9 = inlined_call_operand.vmem [shape: f32[1,32], index: 9, kind: input, shape index: {}]   ;;  %s2924_s10 = inlined_call_operand.vmem [shape: f32[1,32], index: 10, kind: input, shape index: {}]   ;;  %s2925_s11 = inlined_call_operand.vmem [shape: f32[1,32], index: 11, kind: input, shape index: {}]   ;;  %s2926_s12 = inlined_call_operand.hbm [shape: f32[2,8,32], index: 12, kind: output, shape index: {}]  }
   0x1   :  { %2952 = sst [smem:[#allocation26_spill]] %s2915_s1 }
   0x2   :  { %2953 = sst [smem:[#allocation27_spill]] %s2917_s3 }
   0x3   :  { %2954 = sst [smem:[#allocation28_spill]] %s2918_s4 }
   0x4   :  { %2955 = sst [smem:[#allocation29_spill]] %s2920_s6 }
   0x5   :  { %2956 = sst [smem:[#allocation30_spill]] %s2922_s8 }
   0x6   :  { %2957 = sst [smem:[#allocation31_spill]] %s2924_s10 }
   0x7   :  { %2958 = sst [smem:[#allocation32_spill]] %s2925_s11 }
   0x8   :  { %2959 = sst [smem:[#allocation33_spill]] %s2926_s12 }
   0x9   :  { %17 = vsyncpa [#allocation3], 0 }
   0xa   :  { %19 = vsyncpa [#allocation3 + $0x1], 0 }
   0xb   :  { %20 = vsyncpa [#allocation6], 0 }
   0xc   :  { %22 = vsyncpa [#allocation6 + $0x1], 0 }
   0xd   :  { %23 = vsyncpa [#allocation9], 0 }
   0xe   :  { %24 = vsyncpa [#allocation12], 0 }
   0xf   :  { %25 = vsyncpa [#allocation4], 0 }
  0x10   :  { %27 = vsyncpa [#allocation4 + $0x1], 0  ;;  %s2449_s21 = smov 0   ;;  %s2451_s22 = smov 0  }
  0x11   :  { %s2453_s23 = smov 0   ;;  %s2455_s24 = smov 0  }
  0x12 LB: > { %2960 = sst [smem:[#allocation20_spill]] %s2351_s21  ;;  %s2365_s25 = smov [#allocation8]   ;;  %s2363_s24 = sphi %s2455_s24, %s3003_s24   ;;  %s2359_s23 = sphi %s2453_s23, %s3007_s23   ;;  %s2355_s22 = sphi %s2451_s22, %s3006_s22   ;;  %s2351_s21 = sphi %s2449_s21, %s3005_s21  }
  0x13   : > { %2961 = sst [smem:[#allocation21_spill]] %s2363_s24  ;;  %s348_s26 = sshll.u32 %s2365_s25, 4  ;;  %s2475_s26 = int_to_ptr.vmem [resolvable:$true] %s348_s26 }
  0x14   : > { %s2470_s27 = sadd.s32 4294967295, %s2363_s24   ;;  %p1769_p0 = scmp.ge.s32.totalorder %s2363_s24, 1 }
  0x15   : > { %p2939_p1 = scmp.eq.s32.totalorder %s2470_s27, 0  ;;  %p336_p2 = scmp.lt.s32.totalorder %s2363_s24, 3 }
  0x16   : > { %s2366_s29 = smov [#allocation11]   ;;  %s2964_s4 = sld [smem:[#allocation28_spill]] }
  0x17   : > { %p2477_p3 = pnand %p1769_p0, %p336_p2  ;;  %s374_s30 = sshll.u32 %s2366_s29, 4  ;;  %s2490_s30 = int_to_ptr.vmem [resolvable:$true] %s374_s30 }
  0x19   : > { %s2962_s28 = scalar_select %p2477_p3, 1, 0 }
  0x1a   : > { %p1983_p5 = pneg %p2477_p3 }
  0x1c   : > { %p2486_p6 = pnand %p1983_p5, %p2939_p1  ;;  %s2083_s16 = scalar_lea.hbm %s2964_s4, 512 }
  0x1d   : > { %p2084_p7 = scmp.ne.s32.totalorder %s2964_s4, %s2083_s16  ;;  %p2090_p11 = scmp.lt.u32.totalorder %s2083_s16, %s2964_s4 }
  0x1e   : > { %s2963_s13 = scalar_select %p2486_p6, 1, 0 }
  0x1f   : > { %p2500_p8 = pneg %p2486_p6 }
  0x21   : > { %s2965_s19 = scalar_select %p2500_p8, 1, 0 }
  0x22   : > { %p2086_p9 = pnand %p2500_p8, %p2084_p7 }
  0x24   : > { %p2087_p10 = pneg %p2086_p9 }
  0x26   : > { %p2092_p12 = pnand %p2090_p11, %p2087_p10 }
  0x28   : > { %2095 = shalt.err (!%p2092_p12)
}
  0x29   : > { %s2096_s29 = scalar_lea.vmem %s2475_s26, 512  ;;  %p2104_p5 = scmp.lt.s32.totalorder %s2475_s26, %s2475_s26 }
  0x2a   : > { %p2097_p13 = scmp.ne.s32.totalorder %s2475_s26, %s2096_s29  ;;  %p2105_p4 = scmp.lt.s32.totalorder %s2096_s29, %s2096_s29 }
  0x2c   : > { %p2099_p0 = pnand %p2097_p13, %p2500_p8  ;;  %p2106_p7 = por %p2105_p4, %p2104_p5 }
  0x2e   : > { %p2100_p2 = pneg %p2099_p0 }
  0x30   : > { %p2107_p9 = pnand %p2106_p7, %p2100_p2 }
  0x32   : > { %2110 = shalt.err (!%p2107_p9)
}
  0x33   : > { %s2929_s14 = smov 128   ;;  %s2931_s15 = smov 8  }
  0x34   : > { %1986 = dma.hbm_to_vmem [thread:$0]  (!%p2486_p6), %s2964_s4, 512, %s2475_s26, [#allocation9], %s2929_s14, %s2929_s14, %s2931_s15  }
  0x35   : > { %s2966_s6 = sld [smem:[#allocation29_spill]] }
  0x3b   : > { %s2111_s25 = scalar_lea.hbm %s2966_s6, 512 }
  0x3c   : > { %p2112_p4 = scmp.ne.s32.totalorder %s2966_s6, %s2111_s25  ;;  %p2118_p12 = scmp.lt.u32.totalorder %s2111_s25, %s2966_s6 }
  0x3e   : > { %p2114_p10 = pnand %p2112_p4, %p2500_p8 }
  0x40   : > { %p2115_p11 = pneg %p2114_p10 }
  0x42   : > { %p2120_p13 = pnand %p2118_p12, %p2115_p11 }
  0x44   : > { %2123 = shalt.err (!%p2120_p13)
}
  0x45   : > { %s2124_s26 = scalar_lea.vmem %s2490_s30, 512  ;;  %p2132_p7 = scmp.lt.s32.totalorder %s2490_s30, %s2490_s30 }
  0x46   : > { %p2125_p0 = scmp.ne.s32.totalorder %s2490_s30, %s2124_s26  ;;  %p2133_p9 = scmp.lt.s32.totalorder %s2124_s26, %s2124_s26 }
  0x48   : > { %p2127_p2 = pnand %p2125_p0, %p2500_p8  ;;  %p2134_p4 = por %p2133_p9, %p2132_p7 }
  0x4a   : > { %p2128_p5 = pneg %p2127_p2 }
  0x4c   : > { %p2135_p10 = pnand %p2134_p4, %p2128_p5 }
  0x4e   : > { %2138 = shalt.err (!%p2135_p10)
}
  0x4f   : > { %1992 = dma.hbm_to_vmem [thread:$0]  (!%p2486_p6), %s2966_s6, 512, %s2490_s30, [#allocation12], %s2929_s14, %s2929_s14, %s2931_s15  }
  0x50   : > { %s1768_s12 = sadd.s32 4294967294, %s2363_s24   ;;  %s2552_s16 = sadd.s32 1, %s2363_s24  }
  0x51   : > { %2967 = sst [smem:[#allocation22_spill]] %s2552_s16  ;;  %s37_s17 = ssub.s32 %s2363_s24, %s2552_s16 }
  0x52   : > { %s40_s18 = sadd.s32 1, %s2359_s23  ;;  %p38_p11 = scmp.eq.s32.totalorder %s37_s17, 0 }
  0x53   : > { %p47_p12 = scmp.ne.s32.totalorder %s2359_s23, %s2355_s22  ;;  %p48_p13 = scmp.eq.s32.totalorder %s2363_s24, 0 }
  0x54   : > { %p53_p0 = scmp.ne.s32.totalorder %s2355_s22, %s2351_s21  ;;  %p323_p7 = scmp.eq.s32.totalorder %s2470_s27, 1 }
  0x55   : > { %s2563_s20 = scalar_select %p38_p11, %s2359_s23, %s40_s18  }
  0x56   : > { %p49_p2 = por %p48_p13, %p47_p12  ;;  %p2567_p5 = por %p2939_p1, %p53_p0 }
  0x57   : > { %2968 = sst [smem:[#allocation23_spill]] %s2563_s20  ;;  %p329_p9 = scmp.eq.s32.totalorder %s1768_s12, 1 }
  0x58   : > { %s2969_s25 = scalar_select %p2567_p5, 1, 0 }
  0x59   : > { %p2014_p4 = scmp.lt.s32.totalorder %s2363_s24, 2  ;;  %s2933_s30 = sand.u32 1, %s2359_s23  }
  0x5a   : > { %p2574_p10 = por %p323_p7, %p47_p12  ;;  %p2578_p3 = por %p329_p9, %p53_p0 }
  0x5b   : > { %s2584_s10 = sshll.u32 %s2933_s30, 3  ;;  %s2587_s11 = sshll.u32 %s2363_s24, 7 }
  0x5c   : > { %s2970_s29 = scalar_select %p2574_p10, 1, 0 }
  0x5d   : > { %s2972_s26 = scalar_select %p2578_p3, 1, 0 }
  0x5e   : > { %2971 = sst [smem:[#allocation24_spill]] %s2970_s29  ;;  %p2589_p11 = pnand %p2014_p4, %p49_p2 }
  0x5f   : > { %2973 = sst [smem:[#allocation25_spill]] %s2972_s26  ;;  %s431_s12 = sand.u32 1, %s2363_s24  }
  0x60   : > { %s2974_s17 = scalar_select %p2589_p11, 1, 0 }
  0x61   : > { %s2975_s1 = sld [smem:[#allocation26_spill]]  ;;  %s435_s30 = scalar_lea.vmem [#allocation5], %s2584_s10 }
  0x62   : > { %s442_s4 = sshll.u32 %s435_s30, 4  ;;  %s2369_s6 = smov [#allocation10]   ;;  %s2601_s4 = int_to_ptr.vmem [resolvable:$true] %s442_s4 }
  0x63   : > { %s2603_s20 = sshll.u32 %s2369_s6, 4  ;;  %s2605_s16 = scalar_lea.sflag [#allocation6], %s431_s12  ;;  %s362_s20 = int_to_ptr.vmem [resolvable:$true] %s2603_s20 }
  0x64   : > { %p2611_p13 = pneg %p2589_p11 }
  0x66   : > { %s2976_s14 = scalar_select %p2611_p13, 1, 0 }
  0x67   : > { %s2598_s15 = scalar_lea.hbm %s2975_s1, %s2587_s11  ;;  %s2144_s24 = scalar_lea.hbm %s2975_s1, 256 }
  0x68   : > { %s2139_s26 = scalar_lea.hbm %s2598_s15, 128  ;;  %p2145_p7 = scmp.lt.u32.totalorder %s2598_s15, %s2975_s1 }
  0x69   : > { %p2140_p12 = scmp.ne.s32.totalorder %s2598_s15, %s2139_s26  ;;  %p2146_p9 = scmp.lt.u32.totalorder %s2144_s24, %s2139_s26 }
  0x6a   : > { %p2148_p1 = scmp.lt.u32.totalorder %s2139_s26, %s2598_s15 }
  0x6b   : > { %p2142_p0 = pnand %p2611_p13, %p2140_p12  ;;  %p2147_p4 = por %p2146_p9, %p2145_p7 }
  0x6d   : > { %p2143_p2 = pneg %p2142_p0  ;;  %p2149_p3 = por %p2148_p1, %p2147_p4 }
  0x6f   : > { %p2150_p10 = pnand %p2149_p3, %p2143_p2 }
  0x71   : > { %2153 = shalt.err (!%p2150_p10)
}
  0x72   : > { %s2154_s12 = scalar_lea.vmem %s2601_s4, 128  ;;  %s2370_s18 = smov [#allocation5]  }
  0x73   : > { %p2155_p12 = scmp.ne.s32.totalorder %s2601_s4, %s2154_s12  ;;  %s2159_s30 = sshll.u32 %s2370_s18, 4  ;;  %s2160_s30 = int_to_ptr.vmem [resolvable:$false] %s2159_s30 }
  0x74   : > { %s2161_s21 = scalar_lea.vmem %s2160_s30, 256  ;;  %p2162_p6 = scmp.lt.s32.totalorder %s2601_s4, %s2160_s30 }
  0x75   : > { %p2157_p0 = pnand %p2155_p12, %p2611_p13  ;;  %p2163_p8 = scmp.lt.s32.totalorder %s2161_s21, %s2154_s12 }
  0x77   : > { %p2158_p5 = pneg %p2157_p0  ;;  %p2164_p7 = por %p2163_p8, %p2162_p6 }
  0x79   : > { %p2165_p9 = pnand %p2164_p7, %p2158_p5 }
  0x7b   : > { %2168 = shalt.err (!%p2165_p9)
}
  0x7c   : > { %2002 = dma.hbm_to_vmem [thread:$0]  (!%p2589_p11), %s2598_s15, 128, %s2601_s4, %s2605_s16  }
  0x7d   : > { %s2169_s6 = scalar_lea.hbm %s2919_s5, 512  ;;  %p2977_p3 = scmp.ne.s32.totalorder %s2965_s19, 0 }
  0x7e   : > { %p2170_p1 = scmp.ne.s32.totalorder %s2919_s5, %s2169_s6  ;;  %p2176_p5 = scmp.lt.u32.totalorder %s2169_s6, %s2919_s5 }
  0x80   : > { %p2172_p6 = pnand %p2170_p1, %p2977_p3 }
  0x82   : > { %p2173_p8 = pneg %p2172_p6 }
  0x84   : > { %p2178_p10 = pnand %p2176_p5, %p2173_p8 }
  0x86   : > { %2181 = shalt.err (!%p2178_p10)
}
  0x87   : > { %s2182_s21 = scalar_lea.vmem %s362_s20, 512  ;;  %p2190_p0 = scmp.lt.s32.totalorder %s362_s20, %s362_s20 }
  0x88   : > { %p2183_p2 = scmp.ne.s32.totalorder %s362_s20, %s2182_s21  ;;  %p2191_p7 = scmp.lt.s32.totalorder %s2182_s21, %s2182_s21 }
  0x8a   : > { %p2185_p4 = pnand %p2183_p2, %p2977_p3  ;;  %p2192_p9 = por %p2191_p7, %p2190_p0 }
  0x8c   : > { %p2186_p12 = pneg %p2185_p4 }
  0x8e   : > { %p2193_p11 = pnand %p2192_p9, %p2186_p12 }
  0x90   : > { %2196 = shalt.err (!%p2193_p11)
}
  0x91   : > { %p2978_p1 = scmp.ne.s32.totalorder %s2963_s13, 0  ;;  %s2979_s1 = smov 8  }
  0x92   : > { %s2980_s4 = smov 128   ;;  %s2371_s26 = smov [#allocation13]  }
  0x93   : > { %1989 = dma.hbm_to_vmem [thread:$0]  (!%p2978_p1), %s2919_s5, 512, %s362_s20, [#allocation9], %s2980_s4, %s2980_s4, %s2979_s1  }
  0x94   : > { %s387_s6 = sshll.u32 %s2371_s26, 4  ;;  %s2197_s30 = scalar_lea.hbm %s2921_s7, 512  ;;  %s388_s6 = int_to_ptr.vmem [resolvable:$true] %s387_s6 }
  0x95   : > { %p2198_p11 = scmp.ne.s32.totalorder %s2921_s7, %s2197_s30  ;;  %p2204_p5 = scmp.lt.u32.totalorder %s2197_s30, %s2921_s7 }
  0x97   : > { %p2200_p6 = pnand %p2198_p11, %p2977_p3 }
  0x99   : > { %p2201_p8 = pneg %p2200_p6 }
  0x9b   : > { %p2206_p10 = pnand %p2204_p5, %p2201_p8 }
  0x9d   : > { %2209 = shalt.err (!%p2206_p10)
}
  0x9e   : > { %s2210_s20 = scalar_lea.vmem %s388_s6, 512  ;;  %p2218_p0 = scmp.lt.s32.totalorder %s388_s6, %s388_s6 }
  0x9f   : > { %p2211_p2 = scmp.ne.s32.totalorder %s388_s6, %s2210_s20  ;;  %p2219_p7 = scmp.lt.s32.totalorder %s2210_s20, %s2210_s20 }
  0xa1   : > { %p2213_p4 = pnand %p2211_p2, %p2977_p3  ;;  %p2220_p9 = por %p2219_p7, %p2218_p0 }
  0xa3   : > { %p2214_p12 = pneg %p2213_p4 }
  0xa5   : > { %p2221_p13 = pnand %p2220_p9, %p2214_p12 }
  0xa7   : > { %2224 = shalt.err (!%p2221_p13)
}
  0xa8   : > { %1995 = dma.hbm_to_vmem [thread:$0]  (!%p2978_p1), %s2921_s7, 512, %s388_s6, [#allocation12], %s2980_s4, %s2980_s4, %s2979_s1  }
  0xa9   : > { %s2682_s15 = scalar_lea.hbm %s2914_s0, %s2587_s11  ;;  %s417_s13 = scalar_lea.vmem [#allocation2], %s2584_s10 }
  0xaa   : > { %s424_s24 = sshll.u32 %s417_s13, 4  ;;  %s2981_s26 = sand.u32 1, %s2359_s23   ;;  %s425_s24 = int_to_ptr.vmem [resolvable:$true] %s424_s24 }
  0xab   : > { %s414_s18 = scalar_lea.sflag [#allocation3], %s2981_s26  ;;  %s2225_s12 = scalar_lea.hbm %s2682_s15, 128 }
  0xac   : > { %p2226_p13 = scmp.ne.s32.totalorder %s2682_s15, %s2225_s12  ;;  %p2982_p3 = scmp.ne.s32.totalorder %s2976_s14, 0 }
  0xad   : > { %s2230_s6 = scalar_lea.hbm %s2914_s0, 256  ;;  %p2231_p1 = scmp.lt.u32.totalorder %s2682_s15, %s2914_s0 }
  0xae   : > { %p2228_p11 = pnand %p2226_p13, %p2982_p3  ;;  %p2232_p8 = scmp.lt.u32.totalorder %s2230_s6, %s2225_s12 }
  0xaf   : > { %p2234_p10 = scmp.lt.u32.totalorder %s2225_s12, %s2682_s15 }
  0xb0   : > { %p2229_p6 = pneg %p2228_p11  ;;  %p2233_p5 = por %p2232_p8, %p2231_p1 }
  0xb2   : > { %p2235_p2 = por %p2234_p10, %p2233_p5 }
  0xb4   : > { %p2236_p4 = pnand %p2235_p2, %p2229_p6 }
  0xb6   : > { %2239 = shalt.err (!%p2236_p4)
}
  0xb7   : > { %s2240_s20 = scalar_lea.vmem %s425_s24, 128  ;;  %s2372_s3 = smov [#allocation2]  }
  0xb8   : > { %p2241_p12 = scmp.ne.s32.totalorder %s425_s24, %s2240_s20  ;;  %s2245_s8 = sshll.u32 %s2372_s3, 4  ;;  %s2246_s8 = int_to_ptr.vmem [resolvable:$false] %s2245_s8 }
  0xb9   : > { %s2247_s19 = scalar_lea.vmem %s2246_s8, 256  ;;  %p2248_p9 = scmp.lt.s32.totalorder %s425_s24, %s2246_s8 }
  0xba   : > { %p2243_p0 = pnand %p2241_p12, %p2982_p3  ;;  %p2249_p13 = scmp.lt.s32.totalorder %s2247_s19, %s2240_s20 }
  0xbc   : > { %p2244_p7 = pneg %p2243_p0  ;;  %p2250_p11 = por %p2249_p13, %p2248_p9 }
  0xbe   : > { %p2251_p1 = pnand %p2250_p11, %p2244_p7 }
  0xc0   : > { %2254 = shalt.err (!%p2251_p1)
}
  0xc1   : > { %p2983_p8 = scmp.ne.s32.totalorder %s2974_s17, 0  ;;  %s2708_s26 = scalar_lea.hbm %s2916_s2, %s2587_s11 }
  0xc2   : > { %s453_s12 = scalar_lea.vmem [#allocation7], %s2584_s10  ;;  %s2255_s4 = scalar_lea.hbm %s2708_s26, 128 }
  0xc3   : > { %1999 = dma.hbm_to_vmem [thread:$0]  (!%p2983_p8), %s2682_s15, 128, %s425_s24, %s414_s18  }
  0xc4   : > { %s460_s1 = sshll.u32 %s453_s12, 4  ;;  %p2256_p6 = scmp.ne.s32.totalorder %s2708_s26, %s2255_s4  ;;  %s461_s1 = int_to_ptr.vmem [resolvable:$true] %s460_s1 }
  0xc5   : > { %s2260_s15 = scalar_lea.hbm %s2916_s2, 256  ;;  %p2261_p2 = scmp.lt.u32.totalorder %s2708_s26, %s2916_s2 }
  0xc6   : > { %p2258_p5 = pnand %p2256_p6, %p2982_p3  ;;  %p2262_p4 = scmp.lt.u32.totalorder %s2260_s15, %s2255_s4 }
  0xc7   : > { %p2264_p0 = scmp.lt.u32.totalorder %s2255_s4, %s2708_s26 }
  0xc8   : > { %p2259_p10 = pneg %p2258_p5  ;;  %p2263_p12 = por %p2262_p4, %p2261_p2 }
  0xca   : > { %p2265_p7 = por %p2264_p0, %p2263_p12 }
  0xcc   : > { %p2266_p9 = pnand %p2265_p7, %p2259_p10 }
  0xce   : > { %2269 = shalt.err (!%p2266_p9)
}
  0xcf   : > { %s2270_s10 = scalar_lea.vmem %s461_s1, 128  ;;  %s2373_s11 = smov [#allocation7]  }
  0xd0   : > { %p2271_p13 = scmp.ne.s32.totalorder %s461_s1, %s2270_s10  ;;  %s2275_s21 = sshll.u32 %s2373_s11, 4  ;;  %s2276_s21 = int_to_ptr.vmem [resolvable:$false] %s2275_s21 }
  0xd1   : > { %s2277_s20 = scalar_lea.vmem %s2276_s21, 256  ;;  %p2278_p6 = scmp.lt.s32.totalorder %s461_s1, %s2276_s21 }
  0xd2   : > { %p2273_p11 = pnand %p2271_p13, %p2982_p3  ;;  %p2279_p5 = scmp.lt.s32.totalorder %s2277_s20, %s2270_s10 }
  0xd4   : > { %p2274_p1 = pneg %p2273_p11  ;;  %p2280_p8 = por %p2279_p5, %p2278_p6 }
  0xd6   : > { %p2281_p2 = pnand %p2280_p8, %p2274_p1 }
  0xd8   : > { %2284 = shalt.err (!%p2281_p2)
}
  0xd9   : > { %p2984_p4 = scmp.ne.s32.totalorder %s2974_s17, 0  ;;  %p2985_p10 = scmp.ne.s32.totalorder %s2962_s28, 0 }
  0xda   : > { %s2732_s14 = sand.u32 (!%p2985_p10), 1, %s2355_s22   ;;  %p2986_p3 = scmp.ne.s32.totalorder (!%p2985_p10), %s2969_s25, 0 }
  0xdb   : > { %2005 = dma.hbm_to_vmem [thread:$0]  (!%p2984_p4), %s2708_s26, 128, %s461_s1, %s2605_s16  }
  0xdc   : > { %475 = sbr.rel (%p2985_p10) target bundleno = 2145 (0x861), region = 68  ;;  %s2735_s3 = sshll.u32 (!%p2985_p10), %s2732_s14, 3 }
  0xdd   : > { %s478_s8 = scalar_lea.sflag (!%p2985_p10), [#allocation3], %s2732_s14  ;;  %s481_s19 = scalar_lea.vmem (!%p2985_p10), [#allocation2], %s2735_s3 }
  0xe3   : > { %2330 = dma.done.wait (%p2986_p3), %s478_s8, 128  }
  0xe4   : > { %2332 = vsyncadd (%p2986_p3), %s478_s8, 4294967168  ;;  %s486_s28 = sand.u32 1, %s2470_s27   ;;  %s490_s17 = scalar_lea.vmem [#allocation5], %s2735_s3 }
  0xe5   : > { %s487_s16 = scalar_lea.sflag [#allocation6], %s486_s28 }
  0xe6   : > { %2334 = dma.done.wait (%p2986_p3), %s487_s16, 256  }
  0xe7   : > { %2336 = vsyncadd (%p2986_p3), %s487_s16, 4294967040  ;;  %s499_s29 = scalar_lea.vmem [#allocation7], %s2735_s3  ;;  %p2987_p8 = scmp.eq.s32.totalorder %s2470_s27, 0 }
  0xe9   : > { %2338 = dma.done.wait (%p2987_p8), [#allocation9], 1024   ;;  %p2988_p12 = pmov %p2987_p8 }
  0xea   : > { %p2989_p0 = pmov %p2987_p8 }
  0xeb   : > { %2340 = vsyncadd (%p2988_p12), [#allocation9], 4294966272 }
  0xec   : > { %2342 = dma.done.wait (%p2989_p0), [#allocation12], 1024   ;;  %p2990_p7 = pmov %p2989_p0 }
  0xed   : > { %v2374_v0 = vmov 0.0|0.0   ;;  %vm2375_vm0 = vmmov 0   ;;  %v2376_v1 = vmov 0.0   ;;  %v660_v2 = vld [vmem:[#allocation10] sm:$0xff]  ;;  %v661_v3 = vld [vmem:[#allocation10 + $0x8] sm:$0xff]  ;;  %v662_v7 = vld [vmem:[#allocation10 + $0x10] sm:$0xff] }
  0xee   : > { %2344 = vsyncadd (%p2990_p7), [#allocation12], 4294966272  ;;  %1941 = vmatprep.subr.bf16.mxu1 %v2374_v0  ;;  %1935 = vmatprep.subr.bf16.mxu0 %v2374_v0  ;;  %v575_v4 = vld [vmem:[#allocation8] sm:$0xff]  ;;  %v1942_v5 = vpack.c.bf16 %v661_v3, %v660_v2  ;;  %v576_v6 = vld [vmem:[#allocation8 + $0x8] sm:$0xff]  ;;  %vm586_vm1 = vcmask 261120   ;;  %s2991_s1 = sld [smem:[#allocation30_spill]] }
  0xef   : > { %1870 = vmatprep.mubr.msk.f32.mxu1 %vm2375_vm0, %v2376_v1  ;;  %1859 = vmatprep.mubr.msk.f32.mxu0 %vm2375_vm0, %v2376_v1  ;;  %v663_v8 = vld [vmem:[#allocation10 + $0x18] sm:$0xff]  ;;  %v1936_v9 = vpack.c.bf16 %v576_v6, %v575_v4  ;;  %v577_v10 = vld [vmem:[#allocation8 + $0x10] sm:$0xff]  ;;  %v573_v14 = vld [vmem:[%s490_s17] sm:$0xff]  ;;  %vm835_vm2 = vcmask 64512   ;;  %s2377_s4 = smov 120   ;;  %s2378_s6 = smov 112  }
  0xf0   : > { %v578_v11 = vld [vmem:[#allocation8 + $0x18] sm:$0xff]  ;;  %1943 = vmatpush3.bf16.msra.mxu1 %v1942_v5  ;;  %v1945_v12 = vpack.c.bf16 %v663_v8, %v662_v7  ;;  %v1792_v16 = vld [vmem:[%s2923_s9] ss:$0 sm:$0xff]  ;;  %s2379_s30 = smov 104   ;;  %v744_v24 = vld [vmem:[#allocation11] sm:$0xff]  ;;  %p569_p9 = scmp.lt.s32.totalorder %s2470_s27, 1 }
  0xf1   : > { %1937 = vmatpush3.bf16.msra.mxu0 %v1936_v9  ;;  %1944 = vmatprep.subr.bf16.mxu1 %v2374_v0  ;;  %v1939_v13 = vpack.c.bf16 %v578_v11, %v577_v10  ;;  %v572_v15 = vld [vmem:[%s481_s19] sm:$0xff]  ;;  %v745_v25 = vld [vmem:[#allocation11 + $0x8] sm:$0xff]  ;;  %s2992_s10 = sld [smem:[#allocation27_spill]]  ;;  %s2993_s8 = sld [smem:[#allocation31_spill]]  ;;  %vm1505_vm3 = vcmask 130048   ;;  %vm1507_vm4 = vcmask 195584  }
  0xf2   : > { %1938 = vmatprep.subr.bf16.mxu0 %v2374_v0  ;;  %v746_v26 = vld [vmem:[#allocation11 + $0x10] sm:$0xff]  ;;  %v1948_v27 = vpack.c.bf16 %v745_v25, %v744_v24  ;;  %v747_v28 = vld [vmem:[#allocation11 + $0x18] sm:$0xff]  ;;  %s570_s15 = scalar_select %p569_p9, %s2470_s27, 1 }
  0xf3   : > { %v1951_v29 = vpack.c.bf16 %v747_v28, %v746_v26  ;;  %v574_v30 = vld [vmem:[%s499_s29] sm:$0xff]  ;;  %s2380_s19 = smov 8   ;;  %s2381_s28 = smov 16  }
  0xf4   : > { %1946 = vmatpush3.bf16.msra.mxu1 %v1945_v12  ;;  %v1790_v17 = vld [vmem:[%s2991_s1] ss:$0 sm:$0xff]  ;;  %s2382_s16 = smov 24   ;;  %s2994_s17 = sld [smem:[#allocation24_spill]] }
  0xf5   : > { %1940 = vmatpush3.bf16.msra.mxu0 %v1939_v13  ;;  %1884 = vmatprep.subr.mxu1 %v2376_v1  ;;  %s2995_s13 = sld [smem:[#allocation32_spill]]  ;;  %s1812_s26 = sshll.u32 %s2470_s27, 7 }
  0xf6   : > { %1947 = vmatprep.subr.bf16.mxu0 %v2374_v0  ;;  %s568_s12 = scalar_lea.vmem [#allocation14], %s2735_s3  ;;  %s1595_s24 = scalar_lea.sflag [#allocation4], %s2732_s14 }
  0xf7   : > { %1871 = vmatmul.mubr.msk.f32.vlgmr.msra.gmra.mrb[0].mxu1 %vm586_vm1, %v573_v14  ;;  %s571_s11 = scalar_lea.vmem %s2992_s10, %s570_s15  ;;  %v1794_v41 = vld [vmem:[%s2993_s8] ss:$0 sm:$0xff]  ;;  %s1608_s1 = sshll.u32 %s568_s12, 4  ;;  %s2871_s1 = int_to_ptr.vmem [resolvable:$true] %s1608_s1 }
  0xf8   : > { %1860 = vmatmul.mubr.msk.f32.vlgmr.msra.gmra.mrb[0].mxu0 %vm586_vm1, %v572_v15  ;;  %1886 = vmatprep.mubr.msk.f32.mxu1 %vm2375_vm0, %v2376_v1  ;;  %v1796_v31 = vld [vmem:[%s571_s11] ss:$0 sm:$0xff]  ;;  %s2285_s18 = scalar_lea.vmem %s2871_s1, 128  ;;  %s2383_s27 = smov [#allocation14]  }
  0xf9   : > { %1881 = vmatprep.mubr.msk.f32.mxu0 %vm2375_vm0, %v2376_v1  ;;  %1949 = vmatpush3.bf16.msra.mxu0 %v1948_v27  ;;  %p2286_p13 = scmp.ne.s32.totalorder %s2871_s1, %s2285_s18  ;;  %s2289_s3 = sshll.u32 %s2383_s27, 4  ;;  %s2290_s3 = int_to_ptr.vmem [resolvable:$false] %s2289_s3 }
  0xfa   : > { %1950 = vmatprep.subr.bf16.mxu0 %v2374_v0  ;;  %p2997_p11 = scmp.ne.s32.totalorder %s2994_s17, 0  ;;  %s2291_s10 = scalar_lea.vmem %s2290_s3, 256 }
  0xfb   : > { %p2292_p5 = scmp.lt.s32.totalorder %s2871_s1, %s2290_s3  ;;  %p2293_p2 = scmp.lt.s32.totalorder %s2291_s10, %s2285_s18 }
  0xfc   : > { %p2287_p1 = pnand %p2286_p13, %p2997_p11 }
  0xfd   : > { %1952 = vmatpush3.bf16.msra.mxu0 %v1951_v29  ;;  %p2294_p4 = por %p2293_p2, %p2292_p5 }
  0xfe   : > { %1904 = vmatprep.subr.mxu0 %v2376_v1  ;;  %p2288_p6 = pneg %p2287_p1 }
 0x100   : > { %1882 = vmatmul.mubr.msk.f32.vlgmr.msra.gmra.mrb[2].mxu0 %vm586_vm1, %v574_v30  ;;  %p2295_p10 = pnand %p2294_p4, %p2288_p6 }
 0x101   : > { %1906 = vmatprep.mubr.msk.f32.mxu0 %vm2375_vm0, %v2376_v1 }
 0x1ca   : > { %v740_v18 = vpop.f32.mrb[0].mxu1 }
 0x1cb   : > { %v741_v19 = vadd.f32 %v1792_v16, %v740_v18  ;;  %v1872_v20 = vpop.f32.mrb[1].mxu1  ;;  %v656_v21 = vpop.f32.mrb[0].mxu0 }
 0x1cc   : > { %v657_v22 = vadd.f32 %v1790_v17, %v656_v21  ;;  %v1861_v23 = vpop.f32.mrb[1].mxu0 }
 0x1cd   : > { %998 = vrot.lane.b32.xlu1 %v741_v19, %s2377_s4  ;;  %1885 = vmatpush3.xpose.msk.msra.mxu1 %vm835_vm2, %v741_v19 }
 0x1ce   : > { %1889 = vmatprep.subr.mxu1 %v2376_v1 }
 0x1d0   : > { %1887 = vmatmul.mubr.msk.f32.vlgmr.msra.gmra.mrb[2].mxu1 %vm835_vm2, %v657_v22 }
 0x1d1   : > { %996 = vrot.lane.b32.xlu1 %v657_v22, %s2377_s4  ;;  %1891 = vmatprep.mubr.msk.f32.mxu1 %vm2375_vm0, %v2376_v1 }
 0x1d3   : > { %v824_v42 = vpop.f32.mrb[2].mxu0 }
 0x1d4   : > { %v2811_v43 = vadd.f32 %v1794_v41, %v824_v42  ;;  %v1883_v44 = vpop.f32.mrb[3].mxu0 }
 0x1d5   : > { %1162 = vrot.lane.b32.xlu1 %v657_v22, %s2378_s6 }
 0x1d6   : > { %1890 = vmatpush3.msra.mxu1 %v2811_v43 }
 0x1d7   : > { %1894 = vmatprep.subr.mxu1 %v2376_v1 }
 0x1d9   : > { %1329 = vrot.lane.b32.xlu1 %v741_v19, %s2379_s30 }
 0x1dd   : > { %1327 = vrot.lane.b32.xlu1 %v657_v22, %s2379_s30 }
 0x23f   : > { %v999_v45 = vpop.permute.xlu1 %998 }
 0x243   : > { %v997_v46 = vpop.permute.xlu1 %996 }
 0x247   : > { %v1163_v47 = vpop.permute.xlu1 %1162 }
 0x24b   : > { %v1330_v50 = vpop.permute.xlu1 %1329 }
 0x24f   : > { %v1328_v52 = vpop.permute.xlu1 %1327 }
 0x2a3   : > { %v908_v32 = vpop.f32.mrb[2].mxu1 }
 0x2a4   : > { %v909_v33 = vadd.f32 %v1796_v31, %v908_v32  ;;  %v1888_v34 = vpop.f32.mrb[3].mxu1 }
 0x2a5   : > { %v1510_v34 = vld [vmem:[#allocation13 + $0x8] sm:$0xff] }
 0x2a6   : > { %v912_v35 = vsel %vm835_vm2, %v909_v33, -inf }
 0x2a7   : > { %913 = vmax.xlane.f32.xlu0 %v912_v35 }
 0x334   : > { %v914_v36 = vpop.xlane.xlu0 %913 }
 0x335   : > { %v915_v37 = vsub.f32 %v909_v33, %v914_v36  ;;  %v1509_v33 = vld [vmem:[#allocation13] sm:$0xff]  ;;  %v1511_v36 = vld [vmem:[#allocation13 + $0x10] sm:$0xff] }
 0x336   : > { %v1954_v35 = vpack.c.bf16 %v1510_v34, %v1509_v33 }
 0x337   : > { %v916_v38 = vmul.f32 1.442695, %v915_v37  ;;  %v1512_v37 = vld [vmem:[#allocation13 + $0x18] sm:$0xff] }
 0x339   : > { %2067 = vpow2.f32 %v916_v38  ;;  %v1957_v38 = vpack.c.bf16 %v1512_v37, %v1511_v36 }
 0x343   : > { %v2068_v39 = vpop.eup %2067 }
 0x344   : > { %v918_v40 = vsel %vm835_vm2, %v2068_v39, 0.0 }
 0x345   : > { %919 = vadd.xlane.f32.xlu0 %v918_v40 }
 0x35b   : > { %1164 = vrot.lane.b32.xlu0 %v741_v19, %s2378_s6 }
 0x3d2   : > { %v920_v48 = vpop.xlane.xlu0 %919 }
 0x3d3   : > { %2069 = vrcp.f32 %v920_v48 }
 0x3d6   : > { %v1165_v49 = vpop.permute.xlu0 %1164 }
 0x3d7   : > { %1905 = vmatpush3.xpose.msk.msra.mxu0 %vm835_vm2, %v1165_v49  ;;  %v1809_v49 = vld [vmem:[%s2995_s13] ss:$0 sm:$0xff] }
 0x3d8   : > { %1914 = vmatprep.subr.mxu0 %v2376_v1 }
 0x3da   : > { %1907 = vmatmul.mubr.msk.f32.vlgmr.msra.gmra.mrb[4].mxu0 %vm835_vm2, %v1163_v47 }
 0x3db   : > { %1915 = vmatpush3.xpose.msk.msra.mxu0 %vm835_vm2, %v1330_v50  ;;  %1916 = vmatprep.mubr.msk.f32.mxu0 %vm2375_vm0, %v2376_v1 }
 0x3dc   : > { %1953 = vmatprep.subr.bf16.mxu0 %v2374_v0 }
 0x3dd   : > { %v2070_v51 = vpop.eup %2069 }
 0x3de   : > { %v922_v53 = vmul.f32 %v2070_v51, %v2068_v39  ;;  %1917 = vmatmul.mubr.msk.f32.vlgmr.msra.gmra.mrb[6].mxu0 %vm835_vm2, %v1328_v52 }
 0x3df   : > { %1932 = vmatprep.mubr.msk.f32.mxu0 %vm2375_vm0, %v2376_v1  ;;  %1955 = vmatpush3.bf16.msra.mxu0 %v1954_v35 }
 0x3e0   : > { %1892 = vmatmul.mubr.msk.f32.vlgmr.msra.gmra.mrb[4].mxu1 %vm835_vm2, %v922_v53  ;;  %1956 = vmatprep.subr.bf16.mxu0 %v2374_v0 }
 0x3e1   : > { %1895 = vmatpush3.xpose.msk.msra.mxu1 %vm835_vm2, %v999_v45  ;;  %1896 = vmatprep.mubr.msk.f32.mxu1 %vm2375_vm0, %v2376_v1 }
 0x3e2   : > { %1899 = vmatprep.subr.mxu1 %v2376_v1 }
 0x3e3   : > { %1958 = vmatpush3.bf16.msra.mxu0 %v1957_v38 }
 0x3e4   : > { %1897 = vmatmul.mubr.msk.f32.vlgmr.msra.gmra.mrb[6].mxu1 %vm835_vm2, %v997_v46 }
 0x3e5   : > { %1901 = vmatprep.mubr.msk.f32.mxu1 %vm2375_vm0, %v2376_v1 }
 0x4ad   : > { %v1236_v54 = vpop.f32.mrb[4].mxu0 }
 0x4ae   : > { %v1237_v55 = vadd.f32 %v1796_v31, %v1236_v54  ;;  %v1908_v56 = vpop.f32.mrb[5].mxu0 }
 0x4b0   : > { %v1240_v57 = vsel %vm835_vm2, %v1237_v55, -inf }
 0x4b1   : > { %1241 = vmax.xlane.f32.xlu0 %v1240_v57  ;;  %v1401_v58 = vpop.f32.mrb[6].mxu0 }
 0x4b2   : > { %v1918_v59 = vpop.f32.mrb[7].mxu0  ;;  %v1402_v3 = vadd.f32 %v1796_v31, %v1401_v58 }
 0x4b3   : > { %v2835_v60 = vpop.f32.mrb[4].mxu1 }
 0x4b4   : > { %v1893_v61 = vpop.f32.mrb[5].mxu1  ;;  %v1405_v5 = vsel %vm835_vm2, %v1402_v3, -inf }
 0x4b7   : > { %v1070_v62 = vpop.f32.mrb[6].mxu1 }
 0x4b8   : > { %v1071_v63 = vadd.f32 %v1796_v31, %v1070_v62  ;;  %v1898_v2 = vpop.f32.mrb[7].mxu1 }
 0x4ba   : > { %v1074_v4 = vsel %vm835_vm2, %v1071_v63, -inf }
 0x4bb   : > { %1075 = vmax.xlane.f32.xlu1 %v1074_v4 }
 0x4bf   : > { %1406 = vmax.xlane.f32.xlu1 %v1405_v5 }
 0x53e   : > { %v1242_v6 = vpop.xlane.xlu0 %1241 }
 0x53f   : > { %v1243_v7 = vsub.f32 %v1237_v55, %v1242_v6 }
 0x541   : > { %v1244_v8 = vmul.f32 1.442695, %v1243_v7 }
 0x543   : > { %2071 = vpow2.f32 %v1244_v8 }
 0x548   : > { %v1076_v9 = vpop.xlane.xlu1 %1075 }
 0x549   : > { %v1077_v17 = vsub.f32 %v1071_v63, %v1076_v9 }
 0x54b   : > { %v1078_v18 = vmul.f32 1.442695, %v1077_v17 }
 0x54c   : > { %v1407_v10 = vpop.xlane.xlu1 %1406 }
 0x54d   : > { %v2072_v11 = vpop.eup %2071  ;;  %v1408_v12 = vsub.f32 %v1402_v3, %v1407_v10 }
 0x54e   : > { %v1246_v13 = vsel %vm835_vm2, %v2072_v11, 0.0 }
 0x54f   : > { %v1409_v14 = vmul.f32 1.442695, %v1408_v12  ;;  %1247 = vadd.xlane.f32.xlu0 %v1246_v13 }
 0x551   : > { %2073 = vpow2.f32 %v1409_v14 }
 0x552   : > { %2075 = vpow2.f32 %v1078_v18 }
 0x55b   : > { %v2074_v15 = vpop.eup %2073 }
 0x55c   : > { %v1411_v16 = vsel %vm835_vm2, %v2074_v15, 0.0  ;;  %v2076_v19 = vpop.eup %2075 }
 0x55d   : > { %1412 = vadd.xlane.f32.xlu1 %v1411_v16  ;;  %v1080_v20 = vsel %vm835_vm2, %v2076_v19, 0.0 }
 0x565   : > { %1086 = vrot.lane.b32.xlu0 %v2811_v43, %s2377_s4 }
 0x56e   : > { %1251 = vrot.lane.b32.xlu1 %v2811_v43, %s2378_s6 }
 0x592   : > { %1081 = vadd.xlane.f32.xlu1 %v1080_v20 }
 0x5a3   : > { %1416 = vrot.lane.b32.xlu1 %v2811_v43, %s2379_s30  ;;  %s2996_s30 = sld [smem:[#allocation33_spill]] }
 0x5a9   : > { %s2869_s15 = scalar_lea.hbm %s2996_s30, %s1812_s26 }
 0x5dc   : > { %v1248_v21 = vpop.xlane.xlu0 %1247 }
 0x5e0   : > { %v1087_v22 = vpop.permute.xlu0 %1086 }
 0x5e1   : > { %1900 = vmatpush3.msra.mxu1 %v1087_v22 }
 0x5e2   : > { %1909 = vmatprep.subr.mxu1 %v2376_v1 }
 0x5ea   : > { %v1413_v23 = vpop.xlane.xlu1 %1412 }
 0x5ee   : > { %v1252_v24 = vpop.permute.xlu1 %1251 }
 0x61f   : > { %v1082_v25 = vpop.xlane.xlu1 %1081 }
 0x620   : > { %2077 = vrcp.f32 %v1082_v25 }
 0x621   : > { %2079 = vrcp.f32 %v1248_v21 }
 0x622   : > { %2081 = vrcp.f32 %v1413_v23 }
 0x623   : > { %v1417_v31 = vpop.permute.xlu1 %1416 }
 0x62a   : > { %v2078_v26 = vpop.eup %2077 }
 0x62b   : > { %v1084_v27 = vmul.f32 %v2078_v26, %v2076_v19  ;;  %v2080_v28 = vpop.eup %2079 }
 0x62c   : > { %v1250_v29 = vmul.f32 %v2080_v28, %v2072_v11  ;;  %v2082_v30 = vpop.eup %2081 }
 0x62d   : > { %1902 = vmatmul.mubr.msk.f32.vlgmr.msra.gmra.mrb[8].mxu1 %vm835_vm2, %v1084_v27  ;;  %v1415_v32 = vmul.f32 %v2082_v30, %v2074_v15 }
 0x62e   : > { %1910 = vmatpush3.msra.mxu1 %v1252_v24  ;;  %1911 = vmatprep.mubr.msk.f32.mxu1 %vm2375_vm0, %v2376_v1 }
 0x62f   : > { %1919 = vmatprep.subr.mxu1 %v2376_v1 }
 0x631   : > { %1912 = vmatmul.mubr.msk.f32.vlgmr.msra.gmra.mrb[10].mxu1 %vm835_vm2, %v1250_v29 }
 0x632   : > { %1920 = vmatpush3.msra.mxu1 %v1417_v31  ;;  %1921 = vmatprep.mubr.msk.f32.mxu1 %vm2375_vm0, %v2376_v1 }
 0x635   : > { %1922 = vmatmul.mubr.msk.f32.vlgmr.msra.gmra.mrb[12].mxu1 %vm835_vm2, %v1415_v32 }
 0x700   : > { %v1158_v39 = vpop.f32.mrb[8].mxu1 }
 0x701   : > { %1493 = vrot.lane.b32.xlu0 %v1158_v39, %s2380_s19  ;;  %v1903_v40 = vpop.f32.mrb[9].mxu1 }
 0x704   : > { %v1323_v41 = vpop.f32.mrb[10].mxu1 }
 0x705   : > { %1497 = vrot.lane.b32.xlu1 %v1323_v41, %s2381_s28  ;;  %v1913_v1 = vpop.f32.mrb[11].mxu1 }
 0x708   : > { %v1488_v42 = vpop.f32.mrb[12].mxu1 }
 0x709   : > { %1501 = vrot.lane.b32.xlu0 %v1488_v42, %s2382_s16  ;;  %v1923_v43 = vpop.f32.mrb[13].mxu1 }
 0x773   : > { %v1494_v44 = vpop.permute.xlu0 %1493 }
 0x774   : > { %v1504_v45 = vsel %vm835_vm2, %v2835_v60, %v1494_v44 }
 0x777   : > { %v1498_v0 = vpop.permute.xlu1 %1497 }
 0x778   : > { %v1506_v46 = vsel %vm1505_vm3, %v1504_v45, %v1498_v0 }
 0x77b   : > { %v1502_v47 = vpop.permute.xlu0 %1501 }
 0x77c   : > { %v1508_v48 = vsel %vm1507_vm4, %v1506_v46, %v1502_v47 }
 0x77d   : > { %1933 = vmatmul.mubr.msk.f32.vlgmr.msra.gmra.mrb[8].mxu0 %vm586_vm1, %v1508_v48 }
 0x850   : > { %v1589_v50 = vpop.f32.mrb[8].mxu0 }
 0x851   : > { %v1590_v51 = vadd.f32 %v1809_v49, %v1589_v50  ;;  %v1934_v52 = vpop.f32.mrb[9].mxu0 }
 0x853   : > { %1593 = vst.msk [vmem:[%s568_s12] sm:$0xff] %vm586_vm1, %v1590_v51 }
 0x854   : > { %2298 = shalt.err (!%p2295_p10)
}
 0x855   : > { %s2299_s14 = scalar_lea.hbm %s2869_s15, 128  ;;  %s2303_s20 = scalar_lea.hbm %s2996_s30, 256 }
 0x856   : > { %p2300_p3 = scmp.ne.s32.totalorder %s2869_s15, %s2299_s14  ;;  %p2304_p0 = scmp.lt.u32.totalorder %s2869_s15, %s2996_s30 }
 0x857   : > { %p2305_p7 = scmp.lt.u32.totalorder %s2303_s20, %s2299_s14  ;;  %p2307_p13 = scmp.lt.u32.totalorder %s2299_s14, %s2869_s15 }
 0x858   : > { %p2301_p8 = pnand %p2300_p3, %p2997_p11 }
 0x859   : > { %p2306_p9 = por %p2305_p7, %p2304_p0 }
 0x85a   : > { %p2302_p12 = pneg %p2301_p8 }
 0x85b   : > { %p2308_p1 = por %p2307_p13, %p2306_p9 }
 0x85d   : > { %p2309_p6 = pnand %p2308_p1, %p2302_p12 }
 0x85f   : > { %2312 = shalt.err (!%p2309_p6)
}
 0x860   : > { %1981 = dma.vmem_to_hbm [thread:$0]  (%p2997_p11), %s2871_s1, 128, %s2869_s15, %s1595_s24  }
 0x861 PF: > { %s2998_s28 = sld [smem:[#allocation20_spill]]  ;;  %s2999_s16 = sld [smem:[#allocation25_spill]] }
 0x862   : > { %s3000_s29 = sld [smem:[#allocation21_spill]] }
 0x867   : > { %s1620_s25 = sand.u32 1, %s2998_s28   ;;  %p3001_p5 = scmp.ne.s32.totalorder %s2999_s16, 0 }
 0x868   : > { %p3002_p2 = scmp.ge.s32.totalorder %s3000_s29, 2  ;;  %s1621_s13 = scalar_lea.sflag [#allocation4], %s1620_s25 }
 0x86a   : > { %p2007_p4 = pnand %p3002_p2, %p3001_p5 }
 0x86c   : > { %2346 = dma.done.wait (!%p2007_p4), %s1621_s13, 128  }
 0x86d   : > { %2348 = vsyncadd (!%p2007_p4), %s1621_s13, 4294967168  ;;  %s3003_s24 = sld [smem:[#allocation22_spill]]  ;;  %s3004_s26 = sld [smem:[#allocation23_spill]] }
 0x86e   : > { %s3005_s21 = smov %s2355_s22  ;;  %s3006_s22 = smov %s2359_s23 }
 0x873   : > { %p30_p10 = scmp.ge.s32.totalorder %s3003_s24, 4   ;;  %s3007_s23 = smov %s3004_s26 }
 0x875   :  { %32 = sbr.rel (!%p30_p10) target bundleno = 18 (0x12), region = 156 }
 0x87c   :  { %1626 = vsyncpa [#allocation3], 1 }
 0x87d   :  { %1628 = vsyncpa [#allocation3 + $0x1], 1 }
 0x87e   :  { %1629 = vsyncpa [#allocation6], 1 }
 0x87f   :  { %1631 = vsyncpa [#allocation6 + $0x1], 1 }
 0x880   :  { %1632 = vsyncpa [#allocation9], 1 }
 0x881   :  { %1633 = vsyncpa [#allocation12], 1 }
 0x882   :  { %1634 = vsyncpa [#allocation4], 1 }
 0x883   :  { %1636 = vsyncpa [#allocation4 + $0x1], 1 }

</bundles_post_ra>
